<compile_context>
chip_gen: v6e
topology: v6e:2x2x1
jax: 0.10.0
libtpu: 0.0.40
codegen_flags: <defaults>
</compile_context>

<pallas_src>
import jax
import jax.numpy as jnp
from jax.experimental import pallas as pl
from jax.experimental.pallas import tpu as pltpu


def _round_up(x, m):
    return (x + m - 1) // m * m


# ----------------------------- Pallas kernel -------------------------------

def _make_fused_kernel(h_pad, lat_pad, out_pad):
    """Fused forward:
         h1     = tanh(x  @ Wf + bf)    (Embedding folded into enc1)
         lat    = tanh(h1 @ W2 + b2)
         h2     = tanh(lat@ W3 + b3)
         logits = h2 @ Wb + bb          (dec2 folded with deEmbedding linear;
                                         padded lanes biased to -1e30)
         out    = softmax over each contiguous 21-lane group of logits
       Group sums come from one matmul against the block-diagonal ones matrix
       S; padded lanes produce exactly 0 and are sliced away in the wrapper.
    """
    bf16 = jnp.bfloat16
    f32 = jnp.float32

    def kernel(x_ref, wf_ref, w2_ref, w3_ref, wb_ref, s_ref, b_ref, o_ref):
        x = x_ref[...].astype(bf16)

        h1 = jnp.tanh(
            jnp.dot(x, wf_ref[...], preferred_element_type=f32)
            + b_ref[0:1, 0:h_pad])
        lat = jnp.tanh(
            jnp.dot(h1.astype(bf16), w2_ref[...], preferred_element_type=f32)
            + b_ref[1:2, 0:lat_pad])
        h2 = jnp.tanh(
            jnp.dot(lat.astype(bf16), w3_ref[...], preferred_element_type=f32)
            + b_ref[2:3, 0:h_pad])
        # bias row 3 holds -1e30 on padded output lanes -> they never win the
        # max and their exp underflows to exactly 0.
        logits = (
            jnp.dot(h2.astype(bf16), wb_ref[...], preferred_element_type=f32)
            + b_ref[3:4, 0:out_pad])

        # Row-wide max is softmax-invariant within each 21-lane group
        # (tanh-bounded logits, so no cross-group underflow concern).
        m = jnp.max(logits, axis=-1, keepdims=True)            # (bb, 1)
        e = jnp.exp(logits - m)                                 # pad lanes -> 0
        # Per-group sums broadcast back to lanes in one full-width MXU pass;
        # bias row 4 puts 1.0 in the denominator of padded lanes (0/1 = 0).
        s = (jnp.dot(e, s_ref[...], preferred_element_type=f32)
             + b_ref[4:5, 0:out_pad])

        o_ref[...] = e * pl.reciprocal(s, approx=True)

    return kernel


# ------------------------------ parameters ---------------------------------

def _init_linear(key, d_in, d_out):
    # Deterministic synthetic init (PyTorch layout: W is (out, in)).
    kw, kb = jax.random.split(key)
    w = jax.random.normal(kw, (d_out, d_in), jnp.float32) / jnp.sqrt(float(d_in))
    b = jax.random.normal(kb, (d_out,), jnp.float32) * 0.01
    return w, b


def init_params(key, taille, AA_latent, latent_dim):
    ks = jax.random.split(key, 6)
    return {
        "emb":   _init_linear(ks[0], 21, AA_latent),
        "enc1":  _init_linear(ks[1], AA_latent * taille, AA_latent * 100),
        "enc2":  _init_linear(ks[2], AA_latent * 100, latent_dim),
        "dec1":  _init_linear(ks[3], latent_dim, AA_latent * 100),
        "dec2":  _init_linear(ks[4], AA_latent * 100, AA_latent * taille),
        "deemb": _init_linear(ks[5], AA_latent, 21),
    }


def fold_params(params, taille, AA_latent, latent_dim):
    """One-time host-side algebraic folding + lane-friendly zero padding."""
    we, be = params["emb"]      # (AA_latent, 21)
    w1, b1 = params["enc1"]     # (400, AA_latent*taille)
    w2, b2 = params["enc2"]     # (latent_dim, 400)
    w3, b3 = params["dec1"]     # (400, latent_dim)
    w4, b4 = params["dec2"]     # (AA_latent*taille, 400)
    wd, bd = params["deemb"]    # (21, AA_latent)

    f_in = taille * 21
    hidden = AA_latent * 100
    f_out = taille * 21

    with jax.default_matmul_precision("highest"):
        # Embedding (Identity) folded into enc1:  x @ blockdiag(We^T) @ W1^T
        e_blk = jnp.kron(jnp.eye(taille, dtype=jnp.float32), we.T)   # (f_in, AA_latent*taille)
        w_front = e_blk @ w1.T                                       # (f_in, hidden)
        b_front = jnp.tile(be, taille) @ w1.T + b1                   # (hidden,)

        # deEmbedding linear folded into dec2:  h2 @ W4^T @ blockdiag(Wd^T)
        d_blk = jnp.kron(jnp.eye(taille, dtype=jnp.float32), wd.T)   # (AA_latent*taille, f_out)
        w_back = w4.T @ d_blk                                        # (hidden, f_out)
        b_back = b4 @ d_blk + jnp.tile(bd, taille)                   # (f_out,)

    # lane-dense zero padding
    in_pad = _round_up(f_in, 256)        # 168 -> 256
    h_pad = _round_up(hidden, 256)       # 400 -> 512
    lat_pad = _round_up(latent_dim, 128)  # 16 -> 128
    out_pad = _round_up(f_out, 128)      # 168 -> 256
    bias_w = max(h_pad, out_pad, lat_pad)

    bf16 = jnp.bfloat16
    w_front_p = jnp.zeros((in_pad, h_pad), bf16).at[:f_in, :hidden].set(
        w_front.astype(bf16))
    w2_p = jnp.zeros((h_pad, lat_pad), bf16).at[:hidden, :latent_dim].set(
        w2.T.astype(bf16))
    w3_p = jnp.zeros((lat_pad, h_pad), bf16).at[:latent_dim, :hidden].set(
        w3.T.astype(bf16))
    w_back_p = jnp.zeros((h_pad, out_pad), bf16).at[:hidden, :f_out].set(
        w_back.astype(bf16))

    bias_pack = jnp.zeros((5, bias_w), jnp.float32)
    bias_pack = bias_pack.at[0, :hidden].set(b_front)
    bias_pack = bias_pack.at[1, :latent_dim].set(b2)
    bias_pack = bias_pack.at[2, :hidden].set(b3)
    bias_pack = bias_pack.at[3, :f_out].set(b_back)
    bias_pack = bias_pack.at[3, f_out:out_pad].set(-1e30)   # kill padded logits
    bias_pack = bias_pack.at[4, f_out:out_pad].set(1.0)     # denom fix on pad lanes

    # S[i, j] = 1 iff lanes i and j are both valid and in the same 21-lane group.
    lane = jnp.arange(out_pad)
    same = lane[:, None] // 21 == lane[None, :] // 21
    valid = lane < f_out
    S = (same & valid[:, None] & valid[None, :]).astype(jnp.float32)

    return {
        "w_front": w_front_p, "w2": w2_p, "w3": w3_p, "w_back": w_back_p,
        "S": S, "bias": bias_pack,
        "dims": (f_in, in_pad, h_pad, lat_pad, out_pad, f_out, bias_w),
    }


# ------------------------------ forward pass --------------------------------

def autoencoder_v2_forward(x, folded):
    """x: (B, taille*21) float32 -> (B, taille*21) float32 (softmax per branch)."""
    B = x.shape[0]
    f_in, in_pad, h_pad, lat_pad, out_pad, f_out, bias_w = folded["dims"]

    # Row-block sizing: >= 2 grid steps once B is non-trivial (v7x's two
    # TensorCores share the "parallel" axis), larger blocks for big B to
    # amortize the ~0.35us/step overhead; capped at 512 rows (VMEM stays tiny).
    half = _round_up(max((B + 1) // 2, 1), 8)
    block_b = max(8, min(half, 512))
    b_pad = _round_up(B, block_b)

    x_p = jnp.zeros((b_pad, in_pad), jnp.float32).at[:B, :f_in].set(x)

    kernel = _make_fused_kernel(h_pad, lat_pad, out_pad)

    out_p = pl.pallas_call(
        kernel,
        out_shape=jax.ShapeDtypeStruct((b_pad, out_pad), jnp.float32),
        grid=(b_pad // block_b,),
        in_specs=[
            pl.BlockSpec((block_b, in_pad), lambda i: (i, 0)),
            pl.BlockSpec((in_pad, h_pad), lambda i: (0, 0)),
            pl.BlockSpec((h_pad, lat_pad), lambda i: (0, 0)),
            pl.BlockSpec((lat_pad, h_pad), lambda i: (0, 0)),
            pl.BlockSpec((h_pad, out_pad), lambda i: (0, 0)),
            pl.BlockSpec((out_pad, out_pad), lambda i: (0, 0)),
            pl.BlockSpec((5, bias_w), lambda i: (0, 0)),
        ],
        out_specs=pl.BlockSpec((block_b, out_pad), lambda i: (i, 0)),
        compiler_params=pltpu.CompilerParams(
            dimension_semantics=("parallel",)),
    )(x_p, folded["w_front"], folded["w2"], folded["w3"], folded["w_back"],
      folded["S"], folded["bias"])

    return out_p[:B, :f_out]


# pure-JAX f32 reference for a sanity check
def _reference_forward(x, params, taille, AA_latent):
    with jax.default_matmul_precision("highest"):
        B = x.shape[0]
        we, be = params["emb"]
        h = (x.reshape(B, taille, 21) @ we.T + be).reshape(B, taille * AA_latent)
        w1, b1 = params["enc1"]
        w2, b2 = params["enc2"]
        w3, b3 = params["dec1"]
        w4, b4 = params["dec2"]
        h1 = jnp.tanh(h @ w1.T + b1)
        lat = jnp.tanh(h1 @ w2.T + b2)
        h2 = jnp.tanh(lat @ w3.T + b3)
        dec = h2 @ w4.T + b4
        wd, bd = params["deemb"]
        logits = dec.reshape(B, taille, AA_latent) @ wd.T + bd
        return jax.nn.softmax(logits, axis=2).reshape(B, taille * 21)


# ---------------------------------- main ------------------------------------

if __name__ == "__main__":
    taille = 8        # number of branches / sequence positions
    AA_latent = 4     # per-position latent size
    latent_dim = 16   # bottleneck size
    B = 2

    key = jax.random.PRNGKey(0)
    kx, kp = jax.random.split(key)

    params = init_params(kp, taille, AA_latent, latent_dim)
    x = jax.random.uniform(kx, (B, taille * 21), jnp.float32)

    folded = fold_params(params, taille, AA_latent, latent_dim)  # one-time precompute
    out = autoencoder_v2_forward(x, folded)
    out = jax.block_until_ready(out)

    ref = _reference_forward(x, params, taille, AA_latent)
    assert out.shape == (B, taille * 21)
    # Tolerance covers bf16 MXU rounding (~5e-4 abs on these weight scales)
    # plus the approx-reciprocal softmax denominator (~2e-4 rel).
    assert jnp.allclose(out, ref, atol=2e-3, rtol=2e-3), "mismatch vs JAX reference"

    print("KERNEL_OK")
</pallas_src>

<mosaic_0001>
module attributes {stable_mosaic.version = 11 : i64} {
  func.func @kernel(%arg0: i32, %arg1: memref<8x256xf32, #tpu.memory_space<vmem>>, %arg2: memref<256x512xbf16, #tpu.memory_space<vmem>>, %arg3: memref<512x128xbf16, #tpu.memory_space<vmem>>, %arg4: memref<128x512xbf16, #tpu.memory_space<vmem>>, %arg5: memref<512x256xbf16, #tpu.memory_space<vmem>>, %arg6: memref<256x256xf32, #tpu.memory_space<vmem>>, %arg7: memref<5x512xf32, #tpu.memory_space<vmem>>, %arg8: memref<8x256xf32, #tpu.memory_space<vmem>>) attributes {dimension_semantics = [#tpu.dimension_semantics<parallel>], iteration_bounds = array<i64: 1>, scalar_prefetch = 0 : i64, scratch_operands = 0 : i64, tpu.core_type = #tpu.core_type<tc>, window_params = [{transform_indices = @transform_0, window_bounds = array<i64: 8, 256>}, {pipeline_mode = #tpu.pipeline_mode<synchronous>, transform_indices = @transform_1, window_bounds = array<i64: 256, 512>}, {pipeline_mode = #tpu.pipeline_mode<synchronous>, transform_indices = @transform_2, window_bounds = array<i64: 512, 128>}, {pipeline_mode = #tpu.pipeline_mode<synchronous>, transform_indices = @transform_3, window_bounds = array<i64: 128, 512>}, {pipeline_mode = #tpu.pipeline_mode<synchronous>, transform_indices = @transform_4, window_bounds = array<i64: 512, 256>}, {pipeline_mode = #tpu.pipeline_mode<synchronous>, transform_indices = @transform_5, window_bounds = array<i64: 256, 256>}, {pipeline_mode = #tpu.pipeline_mode<synchronous>, transform_indices = @transform_6, window_bounds = array<i64: 5, 512>}, {transform_indices = @transform_7, window_bounds = array<i64: 8, 256>}]} {
    %c0 = arith.constant 0 : index
    %c0_0 = arith.constant 0 : index
    %0 = vector.load %arg1[%c0, %c0_0] : memref<8x256xf32, #tpu.memory_space<vmem>>, vector<8x256xf32>
    %1 = arith.truncf %0 : vector<8x256xf32> to vector<8x256xbf16>
    %c0_1 = arith.constant 0 : index
    %c0_2 = arith.constant 0 : index
    %2 = vector.load %arg2[%c0_1, %c0_2] : memref<256x512xbf16, #tpu.memory_space<vmem>>, vector<256x512xbf16>
    %cst = arith.constant dense<0.000000e+00> : vector<8x512xf32>
    %3 = tpu.matmul %1, %2, %cst {dimension_numbers = #tpu.dot_dimension_numbers<[1], [0], [0], [1], [0, 0, 1, 1], [], []>} : vector<8x256xbf16>, vector<256x512xbf16>, vector<8x512xf32> -> vector<8x512xf32>
    %c0_3 = arith.constant 0 : index
    %c0_4 = arith.constant 0 : index
    %4 = vector.load %arg7[%c0_3, %c0_4] : memref<5x512xf32, #tpu.memory_space<vmem>>, vector<1x512xf32>
    %5 = vector.broadcast %4 : vector<1x512xf32> to vector<8x512xf32>
    %6 = arith.addf %3, %5 : vector<8x512xf32>
    %7 = math.tanh %6 : vector<8x512xf32>
    %8 = arith.truncf %7 : vector<8x512xf32> to vector<8x512xbf16>
    %c0_5 = arith.constant 0 : index
    %c0_6 = arith.constant 0 : index
    %9 = vector.load %arg3[%c0_5, %c0_6] : memref<512x128xbf16, #tpu.memory_space<vmem>>, vector<512x128xbf16>
    %cst_7 = arith.constant dense<0.000000e+00> : vector<8x128xf32>
    %10 = tpu.matmul %8, %9, %cst_7 {dimension_numbers = #tpu.dot_dimension_numbers<[1], [0], [0], [1], [0, 0, 1, 1], [], []>} : vector<8x512xbf16>, vector<512x128xbf16>, vector<8x128xf32> -> vector<8x128xf32>
    %c1 = arith.constant 1 : index
    %c0_8 = arith.constant 0 : index
    %11 = vector.load %arg7[%c1, %c0_8] : memref<5x512xf32, #tpu.memory_space<vmem>>, vector<1x128xf32>
    %12 = vector.broadcast %11 : vector<1x128xf32> to vector<8x128xf32>
    %13 = arith.addf %10, %12 : vector<8x128xf32>
    %14 = math.tanh %13 : vector<8x128xf32>
    %15 = arith.truncf %14 : vector<8x128xf32> to vector<8x128xbf16>
    %c0_9 = arith.constant 0 : index
    %c0_10 = arith.constant 0 : index
    %16 = vector.load %arg4[%c0_9, %c0_10] : memref<128x512xbf16, #tpu.memory_space<vmem>>, vector<128x512xbf16>
    %cst_11 = arith.constant dense<0.000000e+00> : vector<8x512xf32>
    %17 = tpu.matmul %15, %16, %cst_11 {dimension_numbers = #tpu.dot_dimension_numbers<[1], [0], [0], [1], [0, 0, 1, 1], [], []>} : vector<8x128xbf16>, vector<128x512xbf16>, vector<8x512xf32> -> vector<8x512xf32>
    %c2 = arith.constant 2 : index
    %c0_12 = arith.constant 0 : index
    %18 = vector.load %arg7[%c2, %c0_12] : memref<5x512xf32, #tpu.memory_space<vmem>>, vector<1x512xf32>
    %19 = vector.broadcast %18 : vector<1x512xf32> to vector<8x512xf32>
    %20 = arith.addf %17, %19 : vector<8x512xf32>
    %21 = math.tanh %20 : vector<8x512xf32>
    %22 = arith.truncf %21 : vector<8x512xf32> to vector<8x512xbf16>
    %c0_13 = arith.constant 0 : index
    %c0_14 = arith.constant 0 : index
    %23 = vector.load %arg5[%c0_13, %c0_14] : memref<512x256xbf16, #tpu.memory_space<vmem>>, vector<512x256xbf16>
    %cst_15 = arith.constant dense<0.000000e+00> : vector<8x256xf32>
    %24 = tpu.matmul %22, %23, %cst_15 {dimension_numbers = #tpu.dot_dimension_numbers<[1], [0], [0], [1], [0, 0, 1, 1], [], []>} : vector<8x512xbf16>, vector<512x256xbf16>, vector<8x256xf32> -> vector<8x256xf32>
    %c3 = arith.constant 3 : index
    %c0_16 = arith.constant 0 : index
    %25 = vector.load %arg7[%c3, %c0_16] : memref<5x512xf32, #tpu.memory_space<vmem>>, vector<1x256xf32>
    %26 = vector.broadcast %25 : vector<1x256xf32> to vector<8x256xf32>
    %27 = arith.addf %24, %26 : vector<8x256xf32>
    %cst_17 = arith.constant dense<0xFF800000> : vector<8xf32>
    %28 = vector.multi_reduction <maximumf>, %27, %cst_17 [1] : vector<8x256xf32> to vector<8xf32>
    %29 = vector.shape_cast %28 : vector<8xf32> to vector<8x1xf32>
    %30 = vector.broadcast %29 : vector<8x1xf32> to vector<8x256xf32>
    %31 = arith.subf %27, %30 : vector<8x256xf32>
    %32 = math.exp %31 : vector<8x256xf32>
    %c0_18 = arith.constant 0 : index
    %c0_19 = arith.constant 0 : index
    %33 = vector.load %arg6[%c0_18, %c0_19] : memref<256x256xf32, #tpu.memory_space<vmem>>, vector<256x256xf32>
    %cst_20 = arith.constant dense<0.000000e+00> : vector<8x256xf32>
    %34 = tpu.matmul %32, %33, %cst_20 {dimension_numbers = #tpu.dot_dimension_numbers<[1], [0], [0], [1], [0, 0, 1, 1], [], []>} : vector<8x256xf32>, vector<256x256xf32>, vector<8x256xf32> -> vector<8x256xf32>
    %c4 = arith.constant 4 : index
    %c0_21 = arith.constant 0 : index
    %35 = vector.load %arg7[%c4, %c0_21] : memref<5x512xf32, #tpu.memory_space<vmem>>, vector<1x256xf32>
    %36 = vector.broadcast %35 : vector<1x256xf32> to vector<8x256xf32>
    %37 = arith.addf %34, %36 : vector<8x256xf32>
    %38 = tpu.reciprocal %37 {approx = true} : vector<8x256xf32> -> vector<8x256xf32>
    %39 = arith.mulf %32, %38 : vector<8x256xf32>
    %c0_22 = arith.constant 0 : index
    %c0_23 = arith.constant 0 : index
    %40 = vector.load %arg8[%c0_22, %c0_23] : memref<8x256xf32, #tpu.memory_space<vmem>>, vector<8x256xf32>
    tpu.vector_store %arg8[%c0_22, %c0_23], %39 {strides = array<i32>} : memref<8x256xf32, #tpu.memory_space<vmem>>, vector<8x256xf32>,
    return
  }
  func.func @transform_0(%arg0: i32) -> (i32, i32) {
    %c0_i32 = arith.constant 0 : i32
    %c0_i32_0 = arith.constant 0 : i32
    return %arg0, %c0_i32 : i32, i32
  }
  func.func @transform_1(%arg0: i32) -> (i32, i32) {
    %c0_i32 = arith.constant 0 : i32
    %c0_i32_0 = arith.constant 0 : i32
    %c0_i32_1 = arith.constant 0 : i32
    return %c0_i32, %c0_i32_0 : i32, i32
  }
  func.func @transform_2(%arg0: i32) -> (i32, i32) {
    %c0_i32 = arith.constant 0 : i32
    %c0_i32_0 = arith.constant 0 : i32
    %c0_i32_1 = arith.constant 0 : i32
    return %c0_i32, %c0_i32_0 : i32, i32
  }
  func.func @transform_3(%arg0: i32) -> (i32, i32) {
    %c0_i32 = arith.constant 0 : i32
    %c0_i32_0 = arith.constant 0 : i32
    %c0_i32_1 = arith.constant 0 : i32
    return %c0_i32, %c0_i32_0 : i32, i32
  }
  func.func @transform_4(%arg0: i32) -> (i32, i32) {
    %c0_i32 = arith.constant 0 : i32
    %c0_i32_0 = arith.constant 0 : i32
    %c0_i32_1 = arith.constant 0 : i32
    return %c0_i32, %c0_i32_0 : i32, i32
  }
  func.func @transform_5(%arg0: i32) -> (i32, i32) {
    %c0_i32 = arith.constant 0 : i32
    %c0_i32_0 = arith.constant 0 : i32
    %c0_i32_1 = arith.constant 0 : i32
    return %c0_i32, %c0_i32_0 : i32, i32
  }
  func.func @transform_6(%arg0: i32) -> (i32, i32) {
    %c0_i32 = arith.constant 0 : i32
    %c0_i32_0 = arith.constant 0 : i32
    %c0_i32_1 = arith.constant 0 : i32
    return %c0_i32, %c0_i32_0 : i32, i32
  }
  func.func @transform_7(%arg0: i32) -> (i32, i32) {
    %c0_i32 = arith.constant 0 : i32
    %c0_i32_0 = arith.constant 0 : i32
    return %arg0, %c0_i32 : i32, i32
  }
}

</mosaic_0001>

<bundles_post_ra>
// kernel: tpu_custom_call.1
= control target key start
LH: loop header
LB: loop body
LE: loop exit
PB: predicated region body
PF: predicated region fallthrough
CT: control target
= control target key end

     0   :  { %12 = vsyncpa [#allocation3], 0  ;;  %s2747_s0 = inlined_call_operand.hbm [shape: f32[8,256], index: 0, kind: input, shape index: {}]   ;;  %s2748_s1 = inlined_call_operand.hbm [shape: bf16[256,512], index: 1, kind: input, shape index: {}]   ;;  %s2749_s2 = inlined_call_operand.hbm [shape: bf16[512,128], index: 2, kind: input, shape index: {}]   ;;  %s2750_s3 = inlined_call_operand.hbm [shape: bf16[128,512], index: 3, kind: input, shape index: {}]   ;;  %s2751_s4 = inlined_call_operand.hbm [shape: bf16[512,256], index: 4, kind: input, shape index: {}]   ;;  %s2752_s5 = inlined_call_operand.hbm [shape: f32[256,256], index: 5, kind: input, shape index: {}]   ;;  %s2753_s6 = inlined_call_operand.hbm [shape: f32[5,512], index: 6, kind: input, shape index: {}]   ;;  %s2754_s7 = inlined_call_operand.hbm [shape: f32[8,256], index: 7, kind: output, shape index: {}]  }
   0x1   :  { %13 = vsyncpa [#allocation6], 0 }
   0x2   :  { %14 = vsyncpa [#allocation9], 0 }
   0x3   :  { %15 = vsyncpa [#allocation12], 0 }
   0x4   :  { %16 = vsyncpa [#allocation4], 0  ;;  %s2642_s24 = smov [#allocation5]  }
   0x5   :  { %s32_s25 = sshll.u32 %s2642_s24, 4  ;;  %s33_s25 = int_to_ptr.vmem [resolvable:$true] %s32_s25 }
   0x6   :  { %s2480_s26 = scalar_lea.vmem %s33_s25, 8192  ;;  %p2485_p1 = scmp.lt.s32.totalorder %s33_s25, %s33_s25 }
   0x7   :  { %p2481_p0 = scmp.ne.s32.totalorder %s33_s25, %s2480_s26  ;;  %p2486_p2 = scmp.lt.s32.totalorder %s2480_s26, %s2480_s26 }
   0x9   :  { %p2487_p3 = por %p2486_p2, %p2485_p1 }
   0xb   :  { %p2488_p4 = pnand %p2487_p3, %p2481_p0 }
   0xd   :  { %2491 = shalt.err (!%p2488_p4)
}
   0xe   :  { %s2643_s27 = smov 256   ;;  %s2644_s28 = smov 16  }
   0xf   :  { %38 = dma.hbm_to_vmem [thread:$0]  %s2748_s1, 8192, %s33_s25, [#allocation6], %s2643_s27, %s2643_s27, %s2644_s28  }
  0x10   :  { %s2645_s8 = smov [#allocation8]   ;;  %s2646_s10 = smov [#allocation11]  }
  0x11   :  { %s56_s9 = sshll.u32 %s2645_s8, 4  ;;  %s80_s11 = sshll.u32 %s2646_s10, 4  ;;  %s57_s9 = int_to_ptr.vmem [resolvable:$true] %s56_s9  ;;  %s81_s11 = int_to_ptr.vmem [resolvable:$true] %s80_s11 }
  0x12   :  { %s2500_s12 = scalar_lea.vmem %s57_s9, 4096  ;;  %p2505_p6 = scmp.lt.s32.totalorder %s57_s9, %s57_s9 }
  0x13   :  { %p2501_p5 = scmp.ne.s32.totalorder %s57_s9, %s2500_s12  ;;  %p2506_p7 = scmp.lt.s32.totalorder %s2500_s12, %s2500_s12 }
  0x15   :  { %p2507_p8 = por %p2506_p7, %p2505_p6 }
  0x17   :  { %p2508_p9 = pnand %p2507_p8, %p2501_p5 }
  0x19   :  { %2511 = shalt.err (!%p2508_p9)
}
  0x1a   :  { %62 = dma.hbm_to_vmem [thread:$0]  %s2750_s3, 4096, %s57_s9, [#allocation9], %s2643_s27, %s2643_s27, %s2644_s28  }
  0x1b   :  { %s2520_s15 = scalar_lea.vmem %s81_s11, 8192  ;;  %p2525_p11 = scmp.lt.s32.totalorder %s81_s11, %s81_s11 }
  0x1c   :  { %p2521_p10 = scmp.ne.s32.totalorder %s81_s11, %s2520_s15  ;;  %p2526_p12 = scmp.lt.s32.totalorder %s2520_s15, %s2520_s15 }
  0x1e   :  { %p2527_p13 = por %p2526_p12, %p2525_p11 }
  0x20   :  { %p2528_p0 = pnand %p2527_p13, %p2521_p10 }
  0x22   :  { %2531 = shalt.err (!%p2528_p0)
}
  0x23   :  { %86 = dma.hbm_to_vmem [thread:$0]  %s2752_s5, 8192, %s81_s11, [#allocation12], %s2643_s27, %s2643_s27, %s2644_s28  }
  0x24   :  { %s2647_s17 = smov [#allocation2]   ;;  %s2648_s19 = smov [#allocation7]  }
  0x25   :  { %s23_s18 = sshll.u32 %s2647_s17, 4  ;;  %s44_s20 = sshll.u32 %s2648_s19, 4  ;;  %s24_s18 = int_to_ptr.vmem [resolvable:$true] %s23_s18  ;;  %s45_s20 = int_to_ptr.vmem [resolvable:$true] %s44_s20 }
  0x26   :  { %s2540_s21 = scalar_lea.vmem %s24_s18, 256  ;;  %p2545_p2 = scmp.lt.s32.totalorder %s24_s18, %s24_s18 }
  0x27   :  { %p2541_p1 = scmp.ne.s32.totalorder %s24_s18, %s2540_s21  ;;  %p2546_p3 = scmp.lt.s32.totalorder %s2540_s21, %s2540_s21 }
  0x29   :  { %p2547_p4 = por %p2546_p3, %p2545_p2 }
  0x2b   :  { %p2548_p5 = pnand %p2547_p4, %p2541_p1 }
  0x2d   :  { %2551 = shalt.err (!%p2548_p5)
}
  0x2e   :  { %26 = dma.hbm_to_vmem [thread:$0]  %s2747_s0, 256, %s24_s18, [#allocation3]  }
  0x2f   :  { %s2560_s23 = scalar_lea.vmem %s45_s20, 4096  ;;  %p2565_p7 = scmp.lt.s32.totalorder %s45_s20, %s45_s20 }
  0x30   :  { %p2561_p6 = scmp.ne.s32.totalorder %s45_s20, %s2560_s23  ;;  %p2566_p8 = scmp.lt.s32.totalorder %s2560_s23, %s2560_s23 }
  0x32   :  { %p2567_p9 = por %p2566_p8, %p2565_p7 }
  0x34   :  { %p2568_p10 = pnand %p2567_p9, %p2561_p6 }
  0x36   :  { %2571 = shalt.err (!%p2568_p10)
}
  0x37   :  { %s2649_s5 = smov 64   ;;  %s2650_s24 = smov 4  }
  0x38   :  { %50 = dma.hbm_to_vmem [thread:$0]  %s2749_s2, 4096, %s45_s20, [#allocation6], %s2649_s5, %s2649_s5, %s2650_s24  }
  0x39   :  { %s2651_s27 = smov [#allocation10]  }
  0x3a   :  { %s68_s28 = sshll.u32 %s2651_s27, 4  ;;  %s69_s28 = int_to_ptr.vmem [resolvable:$true] %s68_s28 }
  0x3b   :  { %s2580_s29 = scalar_lea.vmem %s69_s28, 8192  ;;  %p2585_p12 = scmp.lt.s32.totalorder %s69_s28, %s69_s28 }
  0x3c   :  { %p2581_p11 = scmp.ne.s32.totalorder %s69_s28, %s2580_s29  ;;  %p2586_p13 = scmp.lt.s32.totalorder %s2580_s29, %s2580_s29 }
  0x3e   :  { %p2587_p0 = por %p2586_p13, %p2585_p12 }
  0x40   :  { %p2588_p1 = pnand %p2587_p0, %p2581_p11 }
  0x42   :  { %2591 = shalt.err (!%p2588_p1)
}
  0x43   :  { %s2652_s0 = smov 128   ;;  %s2653_s30 = smov 8  }
  0x44   :  { %74 = dma.hbm_to_vmem [thread:$0]  %s2751_s4, 8192, %s69_s28, [#allocation9], %s2652_s0, %s2652_s0, %s2653_s30  }
  0x45   :  { %s2654_s10 = smov [#allocation13]  }
  0x46   :  { %s93_s11 = sshll.u32 %s2654_s10, 4  ;;  %s94_s11 = int_to_ptr.vmem [resolvable:$true] %s93_s11 }
  0x47   :  { %s2600_s2 = scalar_lea.vmem %s94_s11, 512  ;;  %p2605_p3 = scmp.lt.s32.totalorder %s94_s11, %s94_s11 }
  0x48   :  { %p2601_p2 = scmp.ne.s32.totalorder %s94_s11, %s2600_s2  ;;  %p2606_p4 = scmp.lt.s32.totalorder %s2600_s2, %s2600_s2 }
  0x4a   :  { %p2607_p5 = por %p2606_p4, %p2605_p3 }
  0x4c   :  { %p2608_p6 = pnand %p2607_p5, %p2601_p2 }
  0x4e   :  { %2611 = shalt.err (!%p2608_p6)
}
  0x4f   :  { %96 = dma.hbm_to_vmem [thread:$0]  %s2753_s6, 512, %s94_s11, [#allocation12]  }
  0x50   :  { %2632 = dma.done.wait [#allocation3], 256  }
  0x51   :  { %2633 = vsyncadd [#allocation3], 4294967040 }
  0x52   :  { %2634 = dma.done.wait [#allocation6], 12288  }
  0x53   :  { %2635 = vsyncadd [#allocation6], 4294955008 }
  0x54   :  { %2636 = dma.done.wait [#allocation9], 12288  }
  0x55   :  { %2637 = vsyncadd [#allocation9], 4294955008 }
  0x56   :  { %2638 = dma.done.wait [#allocation12], 8704  }
  0x57   :  { %2639 = vsyncadd [#allocation12], 4294958592  ;;  %v2174_v0 = vld [vmem:[#allocation5 + $0xe4] ss:$16 sps:$4 sm:$0xff]   ;;  %v2176_v1 = vld [vmem:[#allocation5 + $0xe0] ss:$16 sps:$4 sm:$0xff]  }
  0x58   :  { %529 = vmatprep.subr.bf16.mxu0 %v2174_v0  ;;  %v2177_v2 = vld [vmem:[#allocation5 + $0xc4] ss:$16 sps:$4 sm:$0xff]   ;;  %v2179_v3 = vld [vmem:[#allocation5 + $0xc0] ss:$16 sps:$4 sm:$0xff]   ;;  %v2195_v7 = vld [vmem:[#allocation5 + $0xec] ss:$16 sps:$4 sm:$0xff]  }
  0x59   :  { %530 = vmatpush1.bf16.msra.mxu0 %v2176_v1  ;;  %v2180_v4 = vld [vmem:[#allocation5 + $0xa4] ss:$16 sps:$4 sm:$0xff]   ;;  %v2182_v5 = vld [vmem:[#allocation5 + $0xa0] ss:$16 sps:$4 sm:$0xff]   ;;  %v2197_v8 = vld [vmem:[#allocation5 + $0xe8] ss:$16 sps:$4 sm:$0xff]   ;;  %570 = vmatprep.subr.bf16.mxu1 %v2195_v7 }
  0x5a   :  { %531 = vmatprep.subr.bf16.mxu0 %v2177_v2  ;;  %v2183_v6 = vld [vmem:[#allocation5 + $0x84] ss:$16 sps:$4 sm:$0xff]   ;;  %v2185_v9 = vld [vmem:[#allocation5 + $0x80] ss:$16 sps:$4 sm:$0xff]   ;;  %v2201_v11 = vld [vmem:[#allocation5 + $0xcc] ss:$16 sps:$4 sm:$0xff]   ;;  %571 = vmatpush1.bf16.msra.mxu1 %v2197_v8 }
  0x5b   :  { %v2186_v10 = vld [vmem:[#allocation5 + $0x64] ss:$16 sps:$4 sm:$0xff]   ;;  %v2203_v12 = vld [vmem:[#allocation5 + $0xc8] ss:$16 sps:$4 sm:$0xff]   ;;  %572 = vmatprep.subr.bf16.mxu1 %v2201_v11  ;;  %v2188_v13 = vld [vmem:[#allocation5 + $0x60] ss:$16 sps:$4 sm:$0xff]  }
  0x5c   :  { %v2207_v14 = vld [vmem:[#allocation5 + $0xac] ss:$16 sps:$4 sm:$0xff]   ;;  %v2189_v15 = vld [vmem:[#allocation5 + $0x44] ss:$16 sps:$4 sm:$0xff]   ;;  %v2209_v16 = vld [vmem:[#allocation5 + $0xa8] ss:$16 sps:$4 sm:$0xff]  }
  0x5d   :  { %532 = vmatpush1.bf16.msra.mxu0 %v2179_v3  ;;  %v2213_v17 = vld [vmem:[#allocation5 + $0x8c] ss:$16 sps:$4 sm:$0xff]   ;;  %v2191_v18 = vld [vmem:[#allocation5 + $0x40] ss:$16 sps:$4 sm:$0xff]   ;;  %v2192_v19 = vld [vmem:[#allocation5 + $0x24] ss:$16 sps:$4 sm:$0xff]  }
  0x5e   :  { %533 = vmatprep.subr.bf16.mxu0 %v2180_v4  ;;  %573 = vmatpush1.bf16.msra.mxu1 %v2203_v12  ;;  %v2215_v20 = vld [vmem:[#allocation5 + $0x88] ss:$16 sps:$4 sm:$0xff]   ;;  %v2219_v21 = vld [vmem:[#allocation5 + $0x6c] ss:$16 sps:$4 sm:$0xff]   ;;  %v2194_v22 = vld [vmem:[#allocation5 + $0x20] ss:$16 sps:$4 sm:$0xff]  }
  0x5f   :  { %574 = vmatprep.subr.bf16.mxu1 %v2207_v14  ;;  %v2198_v23 = vld [vmem:[#allocation5 + $0x4] ss:$16 sps:$4 sm:$0xff]   ;;  %v2221_v24 = vld [vmem:[#allocation5 + $0x68] ss:$16 sps:$4 sm:$0xff]   ;;  %v2225_v25 = vld [vmem:[#allocation5 + $0x4c] ss:$16 sps:$4 sm:$0xff]  }
  0x60   :  { %v2200_v26 = vld [vmem:[#allocation5] ss:$16 sps:$4 sm:$0xff]   ;;  %v2204_v27 = vld [vmem:[#allocation5 + $0x1e4] ss:$16 sps:$4 sm:$0xff]   ;;  %v2227_v28 = vld [vmem:[#allocation5 + $0x48] ss:$16 sps:$4 sm:$0xff]  }
  0x61   :  { %534 = vmatpush1.bf16.msra.mxu0 %v2182_v5  ;;  %v2231_v29 = vld [vmem:[#allocation5 + $0x2c] ss:$16 sps:$4 sm:$0xff]   ;;  %v2206_v30 = vld [vmem:[#allocation5 + $0x1e0] ss:$16 sps:$4 sm:$0xff]   ;;  %v2210_v31 = vld [vmem:[#allocation5 + $0x1c4] ss:$16 sps:$4 sm:$0xff]  }
  0x62   :  { %535 = vmatprep.subr.bf16.mxu0 %v2183_v6  ;;  %575 = vmatpush1.bf16.msra.mxu1 %v2209_v16  ;;  %v2233_v32 = vld [vmem:[#allocation5 + $0x28] ss:$16 sps:$4 sm:$0xff]   ;;  %v2237_v33 = vld [vmem:[#allocation5 + $0xc] ss:$16 sps:$4 sm:$0xff]   ;;  %v2212_v35 = vld [vmem:[#allocation5 + $0x1c0] ss:$16 sps:$4 sm:$0xff]  }
  0x63   :  { %576 = vmatprep.subr.bf16.mxu1 %v2213_v17  ;;  %v120_v34 = vld [vmem:[#allocation2 + $0x8] sm:$0xff]  ;;  %v2216_v37 = vld [vmem:[#allocation5 + $0x1a4] ss:$16 sps:$4 sm:$0xff]   ;;  %v2218_v40 = vld [vmem:[#allocation5 + $0x1a0] ss:$16 sps:$4 sm:$0xff]   ;;  %s2656_s4 = smov [#allocation14]  }
  0x64   :  { %v122_v36 = vpack.c.bf16 %v120_v34, %v120_v34  ;;  %v2239_v38 = vld [vmem:[#allocation5 + $0x8] ss:$16 sps:$4 sm:$0xff]   ;;  %v2243_v39 = vld [vmem:[#allocation5 + $0x1ec] ss:$16 sps:$4 sm:$0xff]   ;;  %v2222_v41 = vld [vmem:[#allocation5 + $0x184] ss:$16 sps:$4 sm:$0xff]  }
  0x65   :  { %536 = vmatpush1.bf16.msra.mxu0 %v2185_v9  ;;  %v2245_v42 = vld [vmem:[#allocation5 + $0x1e8] ss:$16 sps:$4 sm:$0xff]   ;;  %v2249_v43 = vld [vmem:[#allocation5 + $0x1cc] ss:$16 sps:$4 sm:$0xff]   ;;  %v2224_v44 = vld [vmem:[#allocation5 + $0x180] ss:$16 sps:$4 sm:$0xff]  }
  0x66   :  { %537 = vmatprep.subr.bf16.mxu0 %v2186_v10  ;;  %577 = vmatpush1.bf16.msra.mxu1 %v2215_v20  ;;  %v2228_v45 = vld [vmem:[#allocation5 + $0x164] ss:$16 sps:$4 sm:$0xff]   ;;  %v2251_v46 = vld [vmem:[#allocation5 + $0x1c8] ss:$16 sps:$4 sm:$0xff]   ;;  %v2252_v47 = vld [vmem:[#allocation5 + $0x1ac] ss:$16 sps:$4 sm:$0xff]  }
  0x67   :  { %578 = vmatprep.subr.bf16.mxu1 %v2219_v21  ;;  %561 = vmatprep.mubr.bf16.mxu0 %v122_v36  ;;  %v2230_v48 = vld [vmem:[#allocation5 + $0x160] ss:$16 sps:$4 sm:$0xff]   ;;  %v2234_v49 = vld [vmem:[#allocation5 + $0x144] ss:$16 sps:$4 sm:$0xff]   ;;  %v2254_v51 = vld [vmem:[#allocation5 + $0x1a8] ss:$16 sps:$4 sm:$0xff]   ;;  %v189_v21 = vlaneseq }
  0x68   :  { %602 = vmatprep.mubr.bf16.mxu1 %v122_v36  ;;  %v2236_v50 = vld [vmem:[#allocation5 + $0x140] ss:$16 sps:$4 sm:$0xff]   ;;  %v2255_v52 = vld [vmem:[#allocation5 + $0x18c] ss:$16 sps:$4 sm:$0xff]   ;;  %v2240_v53 = vld [vmem:[#allocation5 + $0x124] ss:$16 sps:$4 sm:$0xff]  }
  0x69   :  { %538 = vmatpush1.bf16.msra.mxu0 %v2188_v13  ;;  %v2257_v54 = vld [vmem:[#allocation5 + $0x188] ss:$16 sps:$4 sm:$0xff]   ;;  %v2258_v55 = vld [vmem:[#allocation5 + $0x16c] ss:$16 sps:$4 sm:$0xff]   ;;  %v2242_v56 = vld [vmem:[#allocation5 + $0x120] ss:$16 sps:$4 sm:$0xff]  }
  0x6a   :  { %539 = vmatprep.subr.bf16.mxu0 %v2189_v15  ;;  %579 = vmatpush1.bf16.msra.mxu1 %v2221_v24  ;;  %v2246_v57 = vld [vmem:[#allocation5 + $0x104] ss:$16 sps:$4 sm:$0xff]   ;;  %v2260_v58 = vld [vmem:[#allocation5 + $0x168] ss:$16 sps:$4 sm:$0xff]   ;;  %v2261_v59 = vld [vmem:[#allocation5 + $0x14c] ss:$16 sps:$4 sm:$0xff]  }
  0x6b   :  { %580 = vmatprep.subr.bf16.mxu1 %v2225_v25  ;;  %v2248_v60 = vld [vmem:[#allocation5 + $0x100] ss:$16 sps:$4 sm:$0xff]   ;;  %v2263_v62 = vld [vmem:[#allocation5 + $0x148] ss:$16 sps:$4 sm:$0xff]   ;;  %v2264_v63 = vld [vmem:[#allocation5 + $0x12c] ss:$16 sps:$4 sm:$0xff]  }
  0x6c   :  { %v119_v61 = vld [vmem:[#allocation2] sm:$0xff]  ;;  %v2266_v1 = vld [vmem:[#allocation5 + $0x128] ss:$16 sps:$4 sm:$0xff]   ;;  %v2267_v2 = vld [vmem:[#allocation5 + $0x10c] ss:$16 sps:$4 sm:$0xff]   ;;  %s1911_s6 = sshll.u32 %s2656_s4, 4  ;;  %s1912_s6 = int_to_ptr.vmem [resolvable:$true] %s1911_s6 }
  0x6d   :  { %540 = vmatpush1.bf16.msra.mxu0 %v2191_v18  ;;  %v121_v0 = vpack.c.bf16 %v119_v61, %v119_v61  ;;  %v2269_v3 = vld [vmem:[#allocation5 + $0x108] ss:$16 sps:$4 sm:$0xff]   ;;  %v2272_v6 = vld [vmem:[#allocation7 + $0x70] sm:$0xff]   ;;  %v2276_v10 = vld [vmem:[#allocation7 + $0x60] sm:$0xff]   ;;  %s2612_s14 = scalar_lea.vmem %s1912_s6, 256  ;;  %p2617_p8 = scmp.lt.s32.totalorder %s1912_s6, %s1912_s6 }
  0x6e   :  { %541 = vmatprep.subr.bf16.mxu0 %v2192_v19  ;;  %581 = vmatpush1.bf16.msra.mxu1 %v2227_v28  ;;  %v2270_v4 = vld [vmem:[#allocation7 + $0x78] sm:$0xff]   ;;  %v2273_v7 = vld [vmem:[#allocation7 + $0x30] sm:$0xff]   ;;  %v2274_v8 = vld [vmem:[#allocation7 + $0x68] sm:$0xff]   ;;  %p2613_p7 = scmp.ne.s32.totalorder %s1912_s6, %s2612_s14  ;;  %p2618_p9 = scmp.lt.s32.totalorder %s2612_s14, %s2612_s14 }
  0x6f   :  { %582 = vmatprep.subr.bf16.mxu1 %v2231_v29  ;;  %v2271_v5 = vld [vmem:[#allocation7 + $0x38] sm:$0xff]   ;;  %v2275_v9 = vld [vmem:[#allocation7 + $0x28] sm:$0xff]   ;;  %v2277_v11 = vld [vmem:[#allocation7 + $0x20] sm:$0xff]  }
  0x70   :  { %v2278_v12 = vld [vmem:[#allocation7 + $0x58] sm:$0xff]   ;;  %v2280_v14 = vld [vmem:[#allocation7 + $0x50] sm:$0xff]   ;;  %v2282_v16 = vld [vmem:[#allocation7 + $0x48] sm:$0xff]   ;;  %p2619_p10 = por %p2618_p9, %p2617_p8 }
  0x71   :  { %542 = vmatpush1.bf16.msra.mxu0 %v2194_v22  ;;  %v2279_v13 = vld [vmem:[#allocation7 + $0x18] sm:$0xff]   ;;  %v2281_v15 = vld [vmem:[#allocation7 + $0x10] sm:$0xff]   ;;  %v2283_v17 = vld [vmem:[#allocation7 + $0x8] sm:$0xff]   ;;  %v2718_v22 = vshrl.u32 %v189_v21, 7 }
  0x72   :  { %543 = vmatprep.subr.bf16.mxu0 %v2198_v23  ;;  %583 = vmatpush1.bf16.msra.mxu1 %v2233_v32  ;;  %v2284_v18 = vld [vmem:[#allocation7 + $0x40] sm:$0xff]   ;;  %v2286_v20 = vld [vmem:[#allocation7 + $0xf8] sm:$0xff]   ;;  %v2298_v61 = vld [vmem:[#allocation7 + $0xc8] sm:$0xff]   ;;  %p2620_p11 = pnand %p2619_p10, %p2613_p7 }
  0x73   :  { %584 = vmatprep.subr.bf16.mxu1 %v2237_v33  ;;  %v2285_v19 = vld [vmem:[#allocation7] sm:$0xff]   ;;  %v2721_v23 = vsub.s32 0, %v2718_v22  ;;  %v2724_v25 = vsub.s32 1, %v2718_v22  ;;  %v203_v33 = vsub.s32 3, %v2718_v22 }
  0x74   :  { %v187_v24 = vld [vmem:[#allocation13] ss:$8 sm:$0xf] }
  0x75   :  { %544 = vmatpush1.bf16.msra.mxu0 %v2200_v26  ;;  %v192_v26 = vrot.slane %v187_v24, %v2721_v23  ;;  %v2326_v21 = vld [vmem:[#allocation8 + $0x60] ss:$16 sps:$4 sm:$0xff]  }
  0x76   :  { %545 = vmatprep.subr.bf16.mxu0 %v2204_v27  ;;  %585 = vmatpush1.bf16.msra.mxu1 %v2239_v38  ;;  %v196_v27 = vrot.slane %v187_v24, %v2724_v25 }
  0x77   :  { %586 = vmatprep.subr.bf16.mxu1 %v2243_v39 }
  0x79   :  { %546 = vmatpush2.bf16.msra.mxu0 %v2206_v30 }
  0x7a   :  { %547 = vmatprep.subr.bf16.mxu0 %v2210_v31  ;;  %587 = vmatpush2.bf16.msra.mxu1 %v2245_v42 }
  0x7b   :  { %588 = vmatprep.subr.bf16.mxu1 %v2249_v43 }
  0x7d   :  { %548 = vmatpush2.bf16.msra.mxu0 %v2212_v35  ;;  %v204_v35 = vrot.slane %v187_v24, %v203_v33 }
  0x7e   :  { %549 = vmatprep.subr.bf16.mxu0 %v2216_v37  ;;  %589 = vmatpush2.bf16.msra.mxu1 %v2251_v46  ;;  %v2288_v46 = vld [vmem:[#allocation7 + $0xf0] sm:$0xff]  }
  0x7f   :  { %590 = vmatprep.subr.bf16.mxu1 %v2252_v47  ;;  %v2289_v47 = vld [vmem:[#allocation7 + $0xb0] sm:$0xff]  }
  0x81   :  { %550 = vmatpush2.bf16.msra.mxu0 %v2218_v40 }
  0x82   :  { %551 = vmatprep.subr.bf16.mxu0 %v2222_v41  ;;  %591 = vmatpush2.bf16.msra.mxu1 %v2254_v51 }
  0x83   :  { %592 = vmatprep.subr.bf16.mxu1 %v2255_v52 }
  0x85   :  { %552 = vmatpush2.bf16.msra.mxu0 %v2224_v44  ;;  %v2287_v44 = vld [vmem:[#allocation7 + $0xb8] sm:$0xff]  }
  0x86   :  { %553 = vmatprep.subr.bf16.mxu0 %v2228_v45  ;;  %593 = vmatpush2.bf16.msra.mxu1 %v2257_v54 }
  0x87   :  { %594 = vmatprep.subr.bf16.mxu1 %v2258_v55  ;;  %v2293_v55 = vld [vmem:[#allocation7 + $0xa0] sm:$0xff]  }
  0x89   :  { %554 = vmatpush2.bf16.msra.mxu0 %v2230_v48  ;;  %v199_v48 = vsub.s32 2, %v2718_v22 }
  0x8a   :  { %555 = vmatprep.subr.bf16.mxu0 %v2234_v49  ;;  %595 = vmatpush2.bf16.msra.mxu1 %v2260_v58  ;;  %v2290_v49 = vld [vmem:[#allocation7 + $0xe8] sm:$0xff]   ;;  %v2295_v58 = vld [vmem:[#allocation7 + $0x98] sm:$0xff]  }
  0x8b   :  { %596 = vmatprep.subr.bf16.mxu1 %v2261_v59  ;;  %v200_v52 = vrot.slane %v187_v24, %v199_v48  ;;  %v2296_v59 = vld [vmem:[#allocation7 + $0xd0] sm:$0xff]   ;;  %v2329_v24 = vld [vmem:[#allocation8 + $0x68] ss:$16 sps:$4 sm:$0xff]  }
  0x8d   :  { %556 = vmatpush2.bf16.msra.mxu0 %v2236_v50  ;;  %v2291_v50 = vld [vmem:[#allocation7 + $0xa8] sm:$0xff]  }
  0x8e   :  { %557 = vmatprep.subr.bf16.mxu0 %v2240_v53  ;;  %597 = vmatpush2.bf16.msra.mxu1 %v2263_v62  ;;  %v2292_v53 = vld [vmem:[#allocation7 + $0xe0] sm:$0xff]   ;;  %v2299_v62 = vld [vmem:[#allocation7 + $0x88] sm:$0xff]  }
  0x8f   :  { %598 = vmatprep.subr.bf16.mxu1 %v2264_v63  ;;  %v2300_v63 = vld [vmem:[#allocation7 + $0xc0] sm:$0xff]  }
  0x91   :  { %558 = vmatpush2.bf16.msra.mxu0 %v2242_v56 }
  0x92   :  { %559 = vmatprep.subr.bf16.mxu0 %v2246_v57  ;;  %599 = vmatpush2.bf16.msra.mxu1 %v2266_v1  ;;  %v2294_v57 = vld [vmem:[#allocation7 + $0xd8] sm:$0xff]  }
  0x93   :  { %600 = vmatprep.subr.bf16.mxu1 %v2267_v2 }
  0x95   :  { %560 = vmatpush2.bf16.msra.mxu0 %v2248_v60  ;;  %v2297_v60 = vld [vmem:[#allocation7 + $0x90] sm:$0xff]  }
  0x96   :  { %601 = vmatpush2.bf16.msra.mxu1 %v2269_v3  ;;  %v2302_v3 = vld [vmem:[#allocation8 + $0xe0] ss:$16 sps:$4 sm:$0xff]  }
  0x97   :  { %2115 = vmatprep.subr.bf16.mxu1 %v2270_v4  ;;  %v2304_v4 = vld [vmem:[#allocation8 + $0xe4] ss:$16 sps:$4 sm:$0xff]  }
  0x98   :  { %562 = vmatmul.mubr.bf16.vlgmr.msra.gmra.mxu0 %v121_v0  ;;  %1173 = vmatprep.subr.bf16.mxu0 %v2304_v4  ;;  %v2370_v4 = vld [vmem:[#allocation10 + $0x44] ss:$8 sps:$4 sm:$0xff]  }
  0x99   :  { %603 = vmatmul.mubr.bf16.vlgmr.msra.gmra.mxu1 %v121_v0  ;;  %v2301_v0 = vld [vmem:[#allocation7 + $0x80] sm:$0xff]   ;;  %1174 = vmatpush1.bf16.msra.mxu0 %v2302_v3  ;;  %v2365_v3 = vld [vmem:[#allocation10 + $0x150] ss:$8 sps:$4 sm:$0xff]  }
  0x9a   :  { %2116 = vmatpush3.bf16.msra.mxu1 %v2271_v5  ;;  %v2305_v5 = vld [vmem:[#allocation8 + $0xe8] ss:$16 sps:$4 sm:$0xff]  }
  0x9b   :  { %2117 = vmatprep.subr.bf16.mxu1 %v2272_v6  ;;  %v2307_v6 = vld [vmem:[#allocation8 + $0xec] ss:$16 sps:$4 sm:$0xff]  }
  0x9e   :  { %2118 = vmatpush3.bf16.msra.mxu1 %v2273_v7  ;;  %v2310_v7 = vld [vmem:[#allocation8 + $0xc4] ss:$16 sps:$4 sm:$0xff]  }
  0x9f   :  { %2119 = vmatprep.subr.bf16.mxu1 %v2274_v8  ;;  %v2313_v8 = vld [vmem:[#allocation8 + $0xcc] ss:$16 sps:$4 sm:$0xff]   ;;  %1175 = vmatprep.subr.bf16.mxu0 %v2310_v7  ;;  %v2371_v7 = vld [vmem:[#allocation10 + $0x140] ss:$8 sps:$4 sm:$0xff]  }
  0xa2   :  { %2120 = vmatpush3.bf16.msra.mxu1 %v2275_v9  ;;  %v2308_v9 = vld [vmem:[#allocation8 + $0xc0] ss:$16 sps:$4 sm:$0xff]  }
  0xa3   :  { %2121 = vmatprep.subr.bf16.mxu1 %v2276_v10  ;;  %v2311_v10 = vld [vmem:[#allocation8 + $0xc8] ss:$16 sps:$4 sm:$0xff]   ;;  %1176 = vmatpush1.bf16.msra.mxu0 %v2308_v9  ;;  %v2379_v9 = vld [vmem:[#allocation10 + $0x134] ss:$8 sps:$4 sm:$0xff]  }
  0xa6   :  { %2122 = vmatpush3.bf16.msra.mxu1 %v2277_v11  ;;  %v2316_v11 = vld [vmem:[#allocation8 + $0xa4] ss:$16 sps:$4 sm:$0xff]  }
  0xa7   :  { %2123 = vmatprep.subr.bf16.mxu1 %v2278_v12  ;;  %v2319_v12 = vld [vmem:[#allocation8 + $0xac] ss:$16 sps:$4 sm:$0xff]   ;;  %1177 = vmatprep.subr.bf16.mxu0 %v2316_v11  ;;  %v2377_v11 = vld [vmem:[#allocation10 + $0x130] ss:$8 sps:$4 sm:$0xff]  }
  0xaa   :  { %2124 = vmatpush3.bf16.msra.mxu1 %v2279_v13  ;;  %v2314_v13 = vld [vmem:[#allocation8 + $0xa0] ss:$16 sps:$4 sm:$0xff]  }
  0xab   :  { %2125 = vmatprep.subr.bf16.mxu1 %v2280_v14  ;;  %v2317_v14 = vld [vmem:[#allocation8 + $0xa8] ss:$16 sps:$4 sm:$0xff]   ;;  %1178 = vmatpush1.bf16.msra.mxu0 %v2314_v13  ;;  %v2385_v13 = vld [vmem:[#allocation10 + $0x124] ss:$8 sps:$4 sm:$0xff]  }
  0xae   :  { %2126 = vmatpush3.bf16.msra.mxu1 %v2281_v15  ;;  %v2322_v15 = vld [vmem:[#allocation8 + $0x84] ss:$16 sps:$4 sm:$0xff]  }
  0xaf   :  { %2127 = vmatprep.subr.bf16.mxu1 %v2282_v16  ;;  %v2325_v16 = vld [vmem:[#allocation8 + $0x8c] ss:$16 sps:$4 sm:$0xff]   ;;  %1179 = vmatprep.subr.bf16.mxu0 %v2322_v15  ;;  %v2383_v15 = vld [vmem:[#allocation10 + $0x120] ss:$8 sps:$4 sm:$0xff]  }
  0xb2   :  { %2128 = vmatpush3.bf16.msra.mxu1 %v2283_v17  ;;  %v2320_v17 = vld [vmem:[#allocation8 + $0x80] ss:$16 sps:$4 sm:$0xff]  }
  0xb3   :  { %2129 = vmatprep.subr.bf16.mxu1 %v2284_v18  ;;  %v2323_v18 = vld [vmem:[#allocation8 + $0x88] ss:$16 sps:$4 sm:$0xff]   ;;  %1180 = vmatpush1.bf16.msra.mxu0 %v2320_v17  ;;  %v2391_v17 = vld [vmem:[#allocation10 + $0x114] ss:$8 sps:$4 sm:$0xff]  }
  0xb6   :  { %2130 = vmatpush3.bf16.msra.mxu1 %v2285_v19  ;;  %v2328_v19 = vld [vmem:[#allocation8 + $0x64] ss:$16 sps:$4 sm:$0xff]  }
  0xb7   :  { %2137 = vmatprep.subr.bf16.mxu1 %v2286_v20  ;;  %v2331_v20 = vld [vmem:[#allocation8 + $0x6c] ss:$16 sps:$4 sm:$0xff]   ;;  %1181 = vmatprep.subr.bf16.mxu0 %v2328_v19  ;;  %v2389_v19 = vld [vmem:[#allocation10 + $0x110] ss:$8 sps:$4 sm:$0xff]  }
  0xb8   :  { %1182 = vmatpush1.bf16.msra.mxu0 %v2326_v21  ;;  %v2397_v21 = vld [vmem:[#allocation10 + $0x104] ss:$8 sps:$4 sm:$0xff]  }
 0x158   :  { %v563_v28 = vpop.f32.mrf.mxu0 }
 0x159   :  { %v564_v29 = vadd.f32 %v563_v28, %v192_v26  ;;  %v604_v36 = vpop.f32.mrf.mxu1  ;;  %v2334_v26 = vld [vmem:[#allocation8 + $0x44] ss:$16 sps:$4 sm:$0xff]   ;;  %v2332_v28 = vld [vmem:[#allocation8 + $0x40] ss:$16 sps:$4 sm:$0xff]  }
 0x15a   :  { %v565_v30 = vpop.f32.mrf.mxu0  ;;  %v605_v56 = vadd.f32 %v604_v36, %v200_v52  ;;  %1183 = vmatprep.subr.bf16.mxu0 %v2334_v26  ;;  %v2349_v36 = vld [vmem:[#allocation8 + $0xc] ss:$16 sps:$4 sm:$0xff]   ;;  %v2395_v26 = vld [vmem:[#allocation10 + $0x100] ss:$8 sps:$4 sm:$0xff]  }
 0x15b   :  { %v566_v31 = vadd.f32 %v565_v30, %v196_v27  ;;  %2446 = vtanh.f32 %v564_v29  ;;  %v606_v37 = vpop.f32.mrf.mxu1  ;;  %v2337_v27 = vld [vmem:[#allocation8 + $0x4c] ss:$16 sps:$4 sm:$0xff]   ;;  %v2335_v29 = vld [vmem:[#allocation8 + $0x48] ss:$16 sps:$4 sm:$0xff]   ;;  %1184 = vmatpush1.bf16.msra.mxu0 %v2332_v28  ;;  %v2340_v30 = vld [vmem:[#allocation8 + $0x24] ss:$16 sps:$4 sm:$0xff]  }
 0x15c   :  { %v567_v32 = vpop.f32.mrf.mxu0  ;;  %v607_v38 = vadd.f32 %v606_v37, %v204_v35  ;;  %1185 = vmatprep.subr.bf16.mxu0 %v2340_v30  ;;  %v2346_v35 = vld [vmem:[#allocation8 + $0x4] ss:$16 sps:$4 sm:$0xff]   ;;  %v2344_v37 = vld [vmem:[#allocation8] ss:$16 sps:$4 sm:$0xff]  }
 0x15d   :  { %2448 = vtanh.f32 %v566_v31  ;;  %v608_v39 = vpop.f32.mrf.mxu1  ;;  %v2343_v31 = vld [vmem:[#allocation8 + $0x2c] ss:$16 sps:$4 sm:$0xff]   ;;  %v2338_v32 = vld [vmem:[#allocation8 + $0x20] ss:$16 sps:$4 sm:$0xff]  }
 0x15e   :  { %v568_v34 = vpop.f32.mrf.mxu0  ;;  %2450 = vtanh.f32 %v607_v38  ;;  %v2347_v38 = vld [vmem:[#allocation8 + $0x8] ss:$16 sps:$4 sm:$0xff]   ;;  %v2655_v39 = vmov 0   ;;  %v2403_v28 = vld [vmem:[#allocation10 + $0x1f4] ss:$8 sps:$4 sm:$0xff]  }
 0x15f   :  { %v609_v40 = vpop.f32.mrf.mxu1  ;;  %2452 = vtanh.f32 %v605_v56  ;;  %v2341_v34 = vld [vmem:[#allocation8 + $0x28] ss:$16 sps:$4 sm:$0xff]   ;;  %1186 = vmatpush1.bf16.msra.mxu0 %v2338_v32  ;;  %1205 = vmatprep.mubr.bf16.mxu0 %v2655_v39  ;;  %v2409_v32 = vld [vmem:[#allocation10 + $0x1e4] ss:$8 sps:$4 sm:$0xff]  }
 0x160   :  { %1187 = vmatprep.subr.bf16.mxu0 %v2346_v35  ;;  %v2352_v40 = vld [vmem:[#allocation10 + $0x74] ss:$8 sps:$4 sm:$0xff]   ;;  %v2401_v30 = vld [vmem:[#allocation10 + $0x1f0] ss:$8 sps:$4 sm:$0xff]   ;;  %v2407_v35 = vld [vmem:[#allocation10 + $0x1e0] ss:$8 sps:$4 sm:$0xff]  }
 0x163   :  { %1188 = vmatpush1.bf16.msra.mxu0 %v2344_v37  ;;  %v2415_v37 = vld [vmem:[#allocation10 + $0x1d4] ss:$8 sps:$4 sm:$0xff]  }
 0x164   :  { %1660 = vmatprep.subr.bf16.mxu0 %v2352_v40  ;;  %v2418_v40 = vld [vmem:[#allocation10 + $0xc4] ss:$8 sps:$4 sm:$0xff]  }
 0x168   :  { %v2447_v41 = vpop.eup %2446 }
 0x169   :  { %v615_v45 = vpack.c.bf16 %v2447_v41, %v2447_v41  ;;  %v2355_v41 = vld [vmem:[#allocation10 + $0x174] ss:$8 sps:$4 sm:$0xff]  }
 0x16a   :  { %v2449_v42 = vpop.eup %2448 }
 0x16b   :  { %v616_v43 = vpack.c.bf16 %v2449_v42, %v2449_v42  ;;  %v2451_v51 = vpop.eup %2450 }
 0x16c   :  { %v618_v54 = vpack.c.bf16 %v2451_v51, %v2451_v51  ;;  %v2453_v1 = vpop.eup %2452 }
 0x16d   :  { %908 = vmatprep.mubr.bf16.mxu1 %v616_v43  ;;  %v617_v2 = vpack.c.bf16 %v2453_v1, %v2453_v1  ;;  %v2367_v1 = vld [vmem:[#allocation10 + $0x154] ss:$8 sps:$4 sm:$0xff]  }
 0x16e   :  { %909 = vmatmul.mubr.bf16.vlgmr.msra.gmra.mxu1 %v615_v45 }
 0x16f   :  { %2138 = vmatpush3.bf16.msra.mxu1 %v2287_v44  ;;  %948 = vmatprep.mubr.bf16.mxu1 %v618_v54 }
 0x170   :  { %2139 = vmatprep.subr.bf16.mxu1 %v2288_v46 }
 0x173   :  { %2140 = vmatpush3.bf16.msra.mxu1 %v2289_v47  ;;  %v683_v47 = vld [vmem:[#allocation13 + $0x1] ss:$0 sm:$0xff] }
 0x174   :  { %2141 = vmatprep.subr.bf16.mxu1 %v2290_v49 }
 0x177   :  { %2142 = vmatpush3.bf16.msra.mxu1 %v2291_v50 }
 0x178   :  { %2143 = vmatprep.subr.bf16.mxu1 %v2292_v53 }
 0x17b   :  { %2144 = vmatpush3.bf16.msra.mxu1 %v2293_v55 }
 0x17c   :  { %2145 = vmatprep.subr.bf16.mxu1 %v2294_v57  ;;  %v2350_v57 = vld [vmem:[#allocation10 + $0x70] ss:$8 sps:$4 sm:$0xff]  }
 0x17f   :  { %2146 = vmatpush3.bf16.msra.mxu1 %v2295_v58  ;;  %v2353_v58 = vld [vmem:[#allocation10 + $0x170] ss:$8 sps:$4 sm:$0xff]  }
 0x180   :  { %2147 = vmatprep.subr.bf16.mxu1 %v2296_v59 }
 0x183   :  { %2148 = vmatpush3.bf16.msra.mxu1 %v2297_v60  ;;  %v2358_v60 = vld [vmem:[#allocation10 + $0x64] ss:$8 sps:$4 sm:$0xff]  }
 0x184   :  { %2149 = vmatprep.subr.bf16.mxu1 %v2298_v61  ;;  %v2361_v61 = vld [vmem:[#allocation10 + $0x164] ss:$8 sps:$4 sm:$0xff]  }
 0x187   :  { %2150 = vmatpush3.bf16.msra.mxu1 %v2299_v62  ;;  %v2356_v62 = vld [vmem:[#allocation10 + $0x60] ss:$8 sps:$4 sm:$0xff]  }
 0x188   :  { %2151 = vmatprep.subr.bf16.mxu1 %v2300_v63  ;;  %v2359_v63 = vld [vmem:[#allocation10 + $0x160] ss:$8 sps:$4 sm:$0xff]  }
 0x18b   :  { %2152 = vmatpush3.bf16.msra.mxu1 %v2301_v0  ;;  %v2364_v0 = vld [vmem:[#allocation10 + $0x54] ss:$8 sps:$4 sm:$0xff]  }
 0x18c   :  { %1214 = vmatprep.subr.bf16.mxu1 %v2307_v6  ;;  %v2368_v6 = vld [vmem:[#allocation10 + $0x40] ss:$8 sps:$4 sm:$0xff]  }
 0x18e   :  { %949 = vmatmul.mubr.bf16.vlgmr.msra.gmra.mxu1 %v617_v2  ;;  %v2362_v2 = vld [vmem:[#allocation10 + $0x50] ss:$8 sps:$4 sm:$0xff]  }
 0x18f   :  { %1215 = vmatpush1.bf16.msra.mxu1 %v2305_v5  ;;  %1246 = vmatprep.mubr.bf16.mxu1 %v2655_v39  ;;  %v2373_v5 = vld [vmem:[#allocation10 + $0x144] ss:$8 sps:$4 sm:$0xff]   ;;  %v2413_v39 = vld [vmem:[#allocation10 + $0x1d0] ss:$8 sps:$4 sm:$0xff]  }
 0x190   :  { %1216 = vmatprep.subr.bf16.mxu1 %v2313_v8  ;;  %v2376_v8 = vld [vmem:[#allocation10 + $0x34] ss:$8 sps:$4 sm:$0xff]  }
 0x193   :  { %1217 = vmatpush1.bf16.msra.mxu1 %v2311_v10  ;;  %v2374_v10 = vld [vmem:[#allocation10 + $0x30] ss:$8 sps:$4 sm:$0xff]  }
 0x194   :  { %1218 = vmatprep.subr.bf16.mxu1 %v2319_v12  ;;  %v2382_v12 = vld [vmem:[#allocation10 + $0x24] ss:$8 sps:$4 sm:$0xff]  }
 0x197   :  { %1219 = vmatpush1.bf16.msra.mxu1 %v2317_v14  ;;  %v2380_v14 = vld [vmem:[#allocation10 + $0x20] ss:$8 sps:$4 sm:$0xff]  }
 0x198   :  { %1220 = vmatprep.subr.bf16.mxu1 %v2325_v16  ;;  %v2388_v16 = vld [vmem:[#allocation10 + $0x14] ss:$8 sps:$4 sm:$0xff]  }
 0x19b   :  { %1221 = vmatpush1.bf16.msra.mxu1 %v2323_v18  ;;  %v2386_v18 = vld [vmem:[#allocation10 + $0x10] ss:$8 sps:$4 sm:$0xff]  }
 0x19c   :  { %1222 = vmatprep.subr.bf16.mxu1 %v2331_v20  ;;  %v2394_v20 = vld [vmem:[#allocation10 + $0x4] ss:$8 sps:$4 sm:$0xff]  }
 0x19f   :  { %1223 = vmatpush1.bf16.msra.mxu1 %v2329_v24  ;;  %v2392_v24 = vld [vmem:[#allocation10] ss:$8 sps:$4 sm:$0xff]  }
 0x1a0   :  { %1224 = vmatprep.subr.bf16.mxu1 %v2337_v27  ;;  %v2400_v27 = vld [vmem:[#allocation10 + $0xf4] ss:$8 sps:$4 sm:$0xff]  }
 0x1a3   :  { %1225 = vmatpush1.bf16.msra.mxu1 %v2335_v29  ;;  %v2398_v29 = vld [vmem:[#allocation10 + $0xf0] ss:$8 sps:$4 sm:$0xff]  }
 0x1a4   :  { %1226 = vmatprep.subr.bf16.mxu1 %v2343_v31  ;;  %v2406_v31 = vld [vmem:[#allocation10 + $0xe4] ss:$8 sps:$4 sm:$0xff]  }
 0x1a7   :  { %1227 = vmatpush1.bf16.msra.mxu1 %v2341_v34  ;;  %v2404_v34 = vld [vmem:[#allocation10 + $0xe0] ss:$8 sps:$4 sm:$0xff]  }
 0x1a8   :  { %1228 = vmatprep.subr.bf16.mxu1 %v2349_v36  ;;  %v2412_v36 = vld [vmem:[#allocation10 + $0xd4] ss:$8 sps:$4 sm:$0xff]  }
 0x1ab   :  { %1229 = vmatpush1.bf16.msra.mxu1 %v2347_v38  ;;  %v2410_v38 = vld [vmem:[#allocation10 + $0xd0] ss:$8 sps:$4 sm:$0xff]  }
 0x1ac   :  { %1701 = vmatprep.subr.bf16.mxu1 %v2355_v41  ;;  %v2421_v41 = vld [vmem:[#allocation10 + $0x1c4] ss:$8 sps:$4 sm:$0xff]  }
 0x22e   :  { %v2131_v42 = vpop.f32.mrf.mxu1 }
 0x230   :  { %v2132_v43 = vpop.f32.mrf.mxu1 }
 0x231   :  { %v2133_v46 = vadd.f32 %v2132_v43, %v2131_v42  ;;  %v2416_v42 = vld [vmem:[#allocation10 + $0xc0] ss:$8 sps:$4 sm:$0xff]  }
 0x232   :  { %v2134_v44 = vpop.f32.mrf.mxu1  ;;  %v2419_v43 = vld [vmem:[#allocation10 + $0x1c0] ss:$8 sps:$4 sm:$0xff]  }
 0x233   :  { %v911_v51 = vadd.f32 %v2133_v46, %v683_v47  ;;  %v2424_v44 = vld [vmem:[#allocation10 + $0xb4] ss:$8 sps:$4 sm:$0xff]   ;;  %v2422_v46 = vld [vmem:[#allocation10 + $0xb0] ss:$8 sps:$4 sm:$0xff]  }
 0x234   :  { %v2135_v45 = vpop.f32.mrf.mxu1  ;;  %v2425_v47 = vld [vmem:[#allocation10 + $0x1b0] ss:$8 sps:$4 sm:$0xff]  }
 0x235   :  { %v2427_v45 = vld [vmem:[#allocation10 + $0x1b4] ss:$8 sps:$4 sm:$0xff]  }
 0x24e   :  { %v2153_v49 = vpop.f32.mrf.mxu1 }
 0x250   :  { %v2154_v50 = vpop.f32.mrf.mxu1 }
 0x251   :  { %v2155_v52 = vadd.f32 %v2154_v50, %v2153_v49  ;;  %v2430_v49 = vld [vmem:[#allocation10 + $0xa4] ss:$8 sps:$4 sm:$0xff]  }
 0x252   :  { %v2156_v53 = vpop.f32.mrf.mxu1  ;;  %v2433_v50 = vld [vmem:[#allocation10 + $0x1a4] ss:$8 sps:$4 sm:$0xff]  }
 0x253   :  { %v951_v54 = vadd.f32 %v2155_v52, %v911_v51  ;;  %v2428_v51 = vld [vmem:[#allocation10 + $0xa0] ss:$8 sps:$4 sm:$0xff]   ;;  %v2436_v53 = vld [vmem:[#allocation10 + $0x94] ss:$8 sps:$4 sm:$0xff]  }
 0x254   :  { %v2157_v55 = vpop.f32.mrf.mxu1  ;;  %v2431_v52 = vld [vmem:[#allocation10 + $0x1a0] ss:$8 sps:$4 sm:$0xff]  }
 0x255   :  { %2454 = vtanh.f32 %v951_v54  ;;  %v2439_v54 = vld [vmem:[#allocation10 + $0x194] ss:$8 sps:$4 sm:$0xff]   ;;  %v2434_v55 = vld [vmem:[#allocation10 + $0x90] ss:$8 sps:$4 sm:$0xff]  }
 0x262   :  { %v2455_v56 = vpop.eup %2454 }
 0x263   :  { %v957_v59 = vpack.c.bf16 %v2455_v56, %v2455_v56  ;;  %v2437_v56 = vld [vmem:[#allocation10 + $0x190] ss:$8 sps:$4 sm:$0xff]  }
 0x265   :  { %1206 = vmatmul.mubr.bf16.vlgmr.msra.gmra.mxu0 %v957_v59  ;;  %1247 = vmatmul.mubr.bf16.vlgmr.msra.gmra.mxu1 %v957_v59  ;;  %v2440_v59 = vld [vmem:[#allocation10 + $0x80] ss:$8 sps:$4 sm:$0xff]  }
 0x266   :  { %1661 = vmatpush1.bf16.msra.mxu0 %v2350_v57  ;;  %1702 = vmatpush1.bf16.msra.mxu1 %v2353_v58  ;;  %v2442_v57 = vld [vmem:[#allocation10 + $0x84] ss:$8 sps:$4 sm:$0xff]  }
 0x267   :  { %1662 = vmatprep.subr.bf16.mxu0 %v2358_v60  ;;  %1703 = vmatprep.subr.bf16.mxu1 %v2361_v61  ;;  %v2445_v58 = vld [vmem:[#allocation10 + $0x184] ss:$8 sps:$4 sm:$0xff]   ;;  %v2443_v60 = vld [vmem:[#allocation10 + $0x180] ss:$8 sps:$4 sm:$0xff]  }
 0x268   :  { %v991_v61 = vld [vmem:[#allocation13 + $0x2] ss:$8 sm:$0xf] }
 0x26a   :  { %1663 = vmatpush1.bf16.msra.mxu0 %v2356_v62  ;;  %1704 = vmatpush1.bf16.msra.mxu1 %v2359_v63  ;;  %v996_v62 = vrot.slane %v991_v61, %v2721_v23  ;;  %v1004_v63 = vrot.slane %v991_v61, %v199_v48 }
 0x26b   :  { %1664 = vmatprep.subr.bf16.mxu0 %v2364_v0  ;;  %1705 = vmatprep.subr.bf16.mxu1 %v2367_v1  ;;  %v1000_v0 = vrot.slane %v991_v61, %v2724_v25  ;;  %v1008_v1 = vrot.slane %v991_v61, %v203_v33  ;;  %v1809_v61 = vld [vmem:[#allocation11 + $0x1d0] sm:$0xff] }
 0x26e   :  { %1665 = vmatpush1.bf16.msra.mxu0 %v2362_v2  ;;  %1706 = vmatpush1.bf16.msra.mxu1 %v2365_v3 }
 0x26f   :  { %1666 = vmatprep.subr.bf16.mxu0 %v2370_v4  ;;  %1707 = vmatprep.subr.bf16.mxu1 %v2373_v5 }
 0x272   :  { %1667 = vmatpush1.bf16.msra.mxu0 %v2368_v6  ;;  %1708 = vmatpush1.bf16.msra.mxu1 %v2371_v7 }
 0x273   :  { %1668 = vmatprep.subr.bf16.mxu0 %v2376_v8  ;;  %1709 = vmatprep.subr.bf16.mxu1 %v2379_v9 }
 0x276   :  { %1669 = vmatpush1.bf16.msra.mxu0 %v2374_v10  ;;  %1710 = vmatpush1.bf16.msra.mxu1 %v2377_v11 }
 0x277   :  { %1670 = vmatprep.subr.bf16.mxu0 %v2382_v12  ;;  %1711 = vmatprep.subr.bf16.mxu1 %v2385_v13 }
 0x27a   :  { %1671 = vmatpush1.bf16.msra.mxu0 %v2380_v14  ;;  %1712 = vmatpush1.bf16.msra.mxu1 %v2383_v15 }
 0x27b   :  { %1672 = vmatprep.subr.bf16.mxu0 %v2388_v16  ;;  %1713 = vmatprep.subr.bf16.mxu1 %v2391_v17 }
 0x27e   :  { %1673 = vmatpush1.bf16.msra.mxu0 %v2386_v18  ;;  %1714 = vmatpush1.bf16.msra.mxu1 %v2389_v19  ;;  %v1782_v19 = vld [vmem:[#allocation11 + $0xf8] sm:$0xff] }
 0x27f   :  { %1674 = vmatprep.subr.bf16.mxu0 %v2394_v20  ;;  %1715 = vmatprep.subr.bf16.mxu1 %v2397_v21  ;;  %v1781_v20 = vld [vmem:[#allocation11 + $0xf0] sm:$0xff]  ;;  %v1780_v21 = vld [vmem:[#allocation11 + $0xe8] sm:$0xff] }
 0x282   :  { %1675 = vmatpush1.bf16.msra.mxu0 %v2392_v24  ;;  %1716 = vmatpush1.bf16.msra.mxu1 %v2395_v26  ;;  %v1779_v24 = vld [vmem:[#allocation11 + $0xe0] sm:$0xff]  ;;  %v1778_v26 = vld [vmem:[#allocation11 + $0xd8] sm:$0xff] }
 0x283   :  { %1676 = vmatprep.subr.bf16.mxu0 %v2400_v27  ;;  %1717 = vmatprep.subr.bf16.mxu1 %v2403_v28  ;;  %v1777_v27 = vld [vmem:[#allocation11 + $0xd0] sm:$0xff]  ;;  %v1776_v28 = vld [vmem:[#allocation11 + $0xc8] sm:$0xff] }
 0x286   :  { %1677 = vmatpush2.bf16.msra.mxu0 %v2398_v29  ;;  %1718 = vmatpush2.bf16.msra.mxu1 %v2401_v30  ;;  %v1775_v29 = vld [vmem:[#allocation11 + $0xc0] sm:$0xff]  ;;  %v1774_v30 = vld [vmem:[#allocation11 + $0xb8] sm:$0xff] }
 0x287   :  { %1678 = vmatprep.subr.bf16.mxu0 %v2406_v31  ;;  %1719 = vmatprep.subr.bf16.mxu1 %v2409_v32  ;;  %v1773_v31 = vld [vmem:[#allocation11 + $0xb0] sm:$0xff]  ;;  %v1772_v32 = vld [vmem:[#allocation11 + $0xa8] sm:$0xff] }
 0x28a   :  { %1679 = vmatpush2.bf16.msra.mxu0 %v2404_v34  ;;  %1720 = vmatpush2.bf16.msra.mxu1 %v2407_v35  ;;  %v1771_v34 = vld [vmem:[#allocation11 + $0xa0] sm:$0xff]  ;;  %v1770_v35 = vld [vmem:[#allocation11 + $0x98] sm:$0xff] }
 0x28b   :  { %1680 = vmatprep.subr.bf16.mxu0 %v2412_v36  ;;  %1721 = vmatprep.subr.bf16.mxu1 %v2415_v37  ;;  %v1769_v36 = vld [vmem:[#allocation11 + $0x90] sm:$0xff]  ;;  %v1768_v37 = vld [vmem:[#allocation11 + $0x88] sm:$0xff] }
 0x28e   :  { %1681 = vmatpush2.bf16.msra.mxu0 %v2410_v38  ;;  %1722 = vmatpush2.bf16.msra.mxu1 %v2413_v39  ;;  %v1767_v38 = vld [vmem:[#allocation11 + $0x80] sm:$0xff]  ;;  %v1766_v39 = vld [vmem:[#allocation11 + $0x78] sm:$0xff] }
 0x28f   :  { %1682 = vmatprep.subr.bf16.mxu0 %v2418_v40  ;;  %1723 = vmatprep.subr.bf16.mxu1 %v2421_v41  ;;  %v1765_v40 = vld [vmem:[#allocation11 + $0x70] sm:$0xff]  ;;  %v1764_v41 = vld [vmem:[#allocation11 + $0x68] sm:$0xff] }
 0x292   :  { %1683 = vmatpush2.bf16.msra.mxu0 %v2416_v42  ;;  %1724 = vmatpush2.bf16.msra.mxu1 %v2419_v43  ;;  %v1763_v42 = vld [vmem:[#allocation11 + $0x60] sm:$0xff]  ;;  %v1762_v43 = vld [vmem:[#allocation11 + $0x58] sm:$0xff] }
 0x293   :  { %1684 = vmatprep.subr.bf16.mxu0 %v2424_v44  ;;  %1725 = vmatprep.subr.bf16.mxu1 %v2427_v45  ;;  %v1761_v44 = vld [vmem:[#allocation11 + $0x50] sm:$0xff]  ;;  %v1760_v45 = vld [vmem:[#allocation11 + $0x48] sm:$0xff] }
 0x296   :  { %1685 = vmatpush2.bf16.msra.mxu0 %v2422_v46  ;;  %1726 = vmatpush2.bf16.msra.mxu1 %v2425_v47  ;;  %v1759_v46 = vld [vmem:[#allocation11 + $0x40] sm:$0xff]  ;;  %v1758_v47 = vld [vmem:[#allocation11 + $0x38] sm:$0xff] }
 0x297   :  { %1686 = vmatprep.subr.bf16.mxu0 %v2430_v49  ;;  %1727 = vmatprep.subr.bf16.mxu1 %v2433_v50  ;;  %v1757_v49 = vld [vmem:[#allocation11 + $0x30] sm:$0xff]  ;;  %v1756_v50 = vld [vmem:[#allocation11 + $0x28] sm:$0xff] }
 0x29a   :  { %1687 = vmatpush2.bf16.msra.mxu0 %v2428_v51  ;;  %1728 = vmatpush2.bf16.msra.mxu1 %v2431_v52  ;;  %v1755_v51 = vld [vmem:[#allocation11 + $0x20] sm:$0xff]  ;;  %v1754_v52 = vld [vmem:[#allocation11 + $0x18] sm:$0xff] }
 0x29b   :  { %1688 = vmatprep.subr.bf16.mxu0 %v2436_v53  ;;  %1729 = vmatprep.subr.bf16.mxu1 %v2439_v54  ;;  %v1753_v53 = vld [vmem:[#allocation11 + $0x10] sm:$0xff]  ;;  %v1752_v54 = vld [vmem:[#allocation11 + $0x8] sm:$0xff] }
 0x29e   :  { %1689 = vmatpush2.bf16.msra.mxu0 %v2434_v55  ;;  %1730 = vmatpush2.bf16.msra.mxu1 %v2437_v56  ;;  %v1751_v55 = vld [vmem:[#allocation11] sm:$0xff]  ;;  %v1814_v56 = vld [vmem:[#allocation11 + $0x1f8] sm:$0xff] }
 0x29f   :  { %1690 = vmatprep.subr.bf16.mxu0 %v2442_v57  ;;  %1731 = vmatprep.subr.bf16.mxu1 %v2445_v58  ;;  %v1813_v57 = vld [vmem:[#allocation11 + $0x1f0] sm:$0xff]  ;;  %v1812_v58 = vld [vmem:[#allocation11 + $0x1e8] sm:$0xff] }
 0x2a2   :  { %1691 = vmatpush2.bf16.msra.mxu0 %v2440_v59  ;;  %1732 = vmatpush2.bf16.msra.mxu1 %v2443_v60  ;;  %v1811_v59 = vld [vmem:[#allocation11 + $0x1e0] sm:$0xff]  ;;  %v1810_v60 = vld [vmem:[#allocation11 + $0x1d8] sm:$0xff] }
 0x2a3   :  { %1828 = vmatprep.subr.mxu0 %v1782_v19  ;;  %v1800_v19 = vld [vmem:[#allocation11 + $0x188] sm:$0xff] }
 0x325   :  { %v1207_v2 = vpop.f32.mrf.mxu0  ;;  %v1248_v3 = vpop.f32.mrf.mxu1 }
 0x326   :  { %v1208_v4 = vadd.f32 %v1207_v2, %v996_v62  ;;  %v1249_v5 = vadd.f32 %v1248_v3, %v1004_v63  ;;  %v1808_v62 = vld [vmem:[#allocation11 + $0x1c8] sm:$0xff]  ;;  %v1807_v63 = vld [vmem:[#allocation11 + $0x1c0] sm:$0xff] }
 0x327   :  { %v1209_v6 = vpop.f32.mrf.mxu0  ;;  %v1250_v7 = vpop.f32.mrf.mxu1  ;;  %v1804_v2 = vld [vmem:[#allocation11 + $0x1a8] sm:$0xff]  ;;  %v1803_v3 = vld [vmem:[#allocation11 + $0x1a0] sm:$0xff] }
 0x328   :  { %2456 = vtanh.f32 %v1208_v4  ;;  %v1210_v8 = vadd.f32 %v1209_v6, %v1000_v0  ;;  %v1251_v9 = vadd.f32 %v1250_v7, %v1008_v1  ;;  %v1806_v0 = vld [vmem:[#allocation11 + $0x1b8] sm:$0xff]  ;;  %v1805_v1 = vld [vmem:[#allocation11 + $0x1b0] sm:$0xff]  ;;  %v1328_v4 = vld [vmem:[#allocation13 + $0x3] ss:$8 sm:$0x3] }
 0x329   :  { %2458 = vtanh.f32 %v1249_v5  ;;  %v1211_v10 = vpop.f32.mrf.mxu0  ;;  %v1252_v11 = vpop.f32.mrf.mxu1  ;;  %v1333_v5 = vrot.slane %v1328_v4, %v2721_v23  ;;  %v1337_v6 = vrot.slane %v1328_v4, %v2724_v25 }
 0x32a   :  { %2460 = vtanh.f32 %v1210_v8 }
 0x32b   :  { %2462 = vtanh.f32 %v1251_v9  ;;  %v1212_v48 = vpop.f32.mrf.mxu0  ;;  %v1253_v12 = vpop.f32.mrf.mxu1 }
 0x335   :  { %v2457_v13 = vpop.eup %2456 }
 0x336   :  { %v2459_v14 = vpop.eup %2458  ;;  %v1259_v16 = vpack.c.bf16 %v2457_v13, %v2457_v13 }
 0x337   :  { %v2461_v22 = vpop.eup %2460  ;;  %v1261_v18 = vpack.c.bf16 %v2459_v14, %v2459_v14 }
 0x338   :  { %v2463_v33 = vpop.eup %2462  ;;  %v1260_v15 = vpack.c.bf16 %v2461_v22, %v2461_v22 }
 0x339   :  { %v1262_v17 = vpack.c.bf16 %v2463_v33, %v2463_v33 }
 0x33a   :  { %1692 = vmatprep.mubr.bf16.mxu0 %v1260_v15 }
 0x33b   :  { %1733 = vmatprep.mubr.bf16.mxu1 %v1262_v17  ;;  %1693 = vmatmul.mubr.bf16.vlgmr.msra.gmra.mxu0 %v1259_v16  ;;  %v1802_v17 = vld [vmem:[#allocation11 + $0x198] sm:$0xff] }
 0x33c   :  { %1734 = vmatmul.mubr.bf16.vlgmr.msra.gmra.mxu1 %v1261_v18  ;;  %1829 = vmatpush1.msra.mxu0 %v1781_v20  ;;  %v1801_v18 = vld [vmem:[#allocation11 + $0x190] sm:$0xff]  ;;  %v1799_v20 = vld [vmem:[#allocation11 + $0x180] sm:$0xff] }
 0x33d   :  { %1830 = vmatprep.subr.mxu0 %v1780_v21  ;;  %v1798_v21 = vld [vmem:[#allocation11 + $0x178] sm:$0xff] }
 0x33e   :  { %1831 = vmatpush1.msra.mxu0 %v1779_v24  ;;  %v1797_v24 = vld [vmem:[#allocation11 + $0x170] sm:$0xff] }
 0x33f   :  { %1832 = vmatprep.subr.mxu0 %v1778_v26  ;;  %v1796_v26 = vld [vmem:[#allocation11 + $0x168] sm:$0xff] }
 0x340   :  { %1833 = vmatpush1.msra.mxu0 %v1777_v27  ;;  %v1795_v27 = vld [vmem:[#allocation11 + $0x160] sm:$0xff] }
 0x341   :  { %1834 = vmatprep.subr.mxu0 %v1776_v28  ;;  %v1794_v28 = vld [vmem:[#allocation11 + $0x158] sm:$0xff] }
 0x342   :  { %1835 = vmatpush1.msra.mxu0 %v1775_v29  ;;  %v1793_v29 = vld [vmem:[#allocation11 + $0x150] sm:$0xff] }
 0x343   :  { %1836 = vmatprep.subr.mxu0 %v1774_v30  ;;  %v1792_v30 = vld [vmem:[#allocation11 + $0x148] sm:$0xff] }
 0x344   :  { %1837 = vmatpush1.msra.mxu0 %v1773_v31  ;;  %v1791_v31 = vld [vmem:[#allocation11 + $0x140] sm:$0xff] }
 0x345   :  { %1838 = vmatprep.subr.mxu0 %v1772_v32  ;;  %v1790_v32 = vld [vmem:[#allocation11 + $0x138] sm:$0xff] }
 0x346   :  { %1839 = vmatpush1.msra.mxu0 %v1771_v34  ;;  %v1789_v34 = vld [vmem:[#allocation11 + $0x130] sm:$0xff] }
 0x347   :  { %1840 = vmatprep.subr.mxu0 %v1770_v35  ;;  %v1788_v35 = vld [vmem:[#allocation11 + $0x128] sm:$0xff] }
 0x348   :  { %1841 = vmatpush1.msra.mxu0 %v1769_v36  ;;  %v1787_v36 = vld [vmem:[#allocation11 + $0x120] sm:$0xff] }
 0x349   :  { %1842 = vmatprep.subr.mxu0 %v1768_v37  ;;  %v1786_v37 = vld [vmem:[#allocation11 + $0x118] sm:$0xff] }
 0x34a   :  { %1843 = vmatpush1.msra.mxu0 %v1767_v38  ;;  %v1785_v38 = vld [vmem:[#allocation11 + $0x110] sm:$0xff] }
 0x34b   :  { %1844 = vmatprep.subr.mxu0 %v1766_v39  ;;  %v1784_v39 = vld [vmem:[#allocation11 + $0x108] sm:$0xff] }
 0x34c   :  { %1845 = vmatpush1.msra.mxu0 %v1765_v40  ;;  %v1783_v40 = vld [vmem:[#allocation11 + $0x100] sm:$0xff] }
 0x34d   :  { %1846 = vmatprep.subr.mxu0 %v1764_v41 }
 0x34e   :  { %1847 = vmatpush1.msra.mxu0 %v1763_v42 }
 0x34f   :  { %1848 = vmatprep.subr.mxu0 %v1762_v43 }
 0x350   :  { %1849 = vmatpush1.msra.mxu0 %v1761_v44 }
 0x351   :  { %1850 = vmatprep.subr.mxu0 %v1760_v45 }
 0x352   :  { %1851 = vmatpush1.msra.mxu0 %v1759_v46 }
 0x353   :  { %1852 = vmatprep.subr.mxu0 %v1758_v47 }
 0x354   :  { %1853 = vmatpush1.msra.mxu0 %v1757_v49  ;;  %v1816_v49 = vld [vmem:[#allocation13 + $0x4] ss:$8 sm:$0x3] }
 0x355   :  { %1854 = vmatprep.subr.mxu0 %v1756_v50  ;;  %v1821_v50 = vrot.slane %v1816_v49, %v2721_v23 }
 0x356   :  { %1855 = vmatpush1.msra.mxu0 %v1755_v51  ;;  %v1825_v51 = vrot.slane %v1816_v49, %v2724_v25 }
 0x357   :  { %1856 = vmatprep.subr.mxu0 %v1754_v52 }
 0x358   :  { %1857 = vmatpush1.msra.mxu0 %v1753_v53 }
 0x359   :  { %1858 = vmatprep.subr.mxu0 %v1752_v54 }
 0x35a   :  { %1859 = vmatpush1.msra.mxu0 %v1751_v55 }
 0x35b   :  { %1860 = vmatprep.subr.mxu0 %v1814_v56 }
 0x35c   :  { %1861 = vmatpush2.msra.mxu0 %v1813_v57 }
 0x35d   :  { %1862 = vmatprep.subr.mxu0 %v1812_v58 }
 0x35e   :  { %1863 = vmatpush2.msra.mxu0 %v1811_v59 }
 0x35f   :  { %1864 = vmatprep.subr.mxu0 %v1810_v60 }
 0x360   :  { %1865 = vmatpush2.msra.mxu0 %v1809_v61 }
 0x361   :  { %1866 = vmatprep.subr.mxu0 %v1808_v62 }
 0x362   :  { %1867 = vmatpush2.msra.mxu0 %v1807_v63 }
 0x363   :  { %1868 = vmatprep.subr.mxu0 %v1806_v0 }
 0x364   :  { %1869 = vmatpush2.msra.mxu0 %v1805_v1 }
 0x365   :  { %1870 = vmatprep.subr.mxu0 %v1804_v2 }
 0x366   :  { %1871 = vmatpush2.msra.mxu0 %v1803_v3 }
 0x367   :  { %1872 = vmatprep.subr.mxu0 %v1802_v17 }
 0x368   :  { %1873 = vmatpush2.msra.mxu0 %v1801_v18 }
 0x369   :  { %1874 = vmatprep.subr.mxu0 %v1800_v19 }
 0x36a   :  { %1875 = vmatpush2.msra.mxu0 %v1799_v20 }
 0x36b   :  { %1876 = vmatprep.subr.mxu0 %v1798_v21 }
 0x36c   :  { %1877 = vmatpush2.msra.mxu0 %v1797_v24 }
 0x36d   :  { %1878 = vmatprep.subr.mxu0 %v1796_v26 }
 0x36e   :  { %1879 = vmatpush2.msra.mxu0 %v1795_v27 }
 0x36f   :  { %1880 = vmatprep.subr.mxu0 %v1794_v28 }
 0x370   :  { %1881 = vmatpush2.msra.mxu0 %v1793_v29 }
 0x371   :  { %1882 = vmatprep.subr.mxu0 %v1792_v30 }
 0x372   :  { %1883 = vmatpush2.msra.mxu0 %v1791_v31 }
 0x373   :  { %1884 = vmatprep.subr.mxu0 %v1790_v32 }
 0x374   :  { %1885 = vmatpush2.msra.mxu0 %v1789_v34 }
 0x375   :  { %1886 = vmatprep.subr.mxu0 %v1788_v35 }
 0x376   :  { %1887 = vmatpush2.msra.mxu0 %v1787_v36 }
 0x377   :  { %1888 = vmatprep.subr.mxu0 %v1786_v37 }
 0x378   :  { %1889 = vmatpush2.msra.mxu0 %v1785_v38 }
 0x379   :  { %1890 = vmatprep.subr.mxu0 %v1784_v39 }
 0x37a   :  { %1891 = vmatpush2.msra.mxu0 %v1783_v40 }
 0x3fb   :  { %v1694_v7 = vpop.f32.mrf.mxu0 }
 0x3fc   :  { %v1695_v8 = vadd.f32 %v1694_v7, %v1333_v5  ;;  %v1735_v9 = vpop.f32.mrf.mxu1 }
 0x3fd   :  { %v1696_v10 = vpop.f32.mrf.mxu0 }
 0x3fe   :  { %v1697_v11 = vadd.f32 %v1696_v10, %v1337_v6  ;;  %v1737_v48 = vpop.f32.mrf.mxu1  ;;  %v1736_v13 = vadd.f32 %v1735_v9, %v1695_v8 }
 0x3ff   :  { %v1698_v12 = vpop.f32.mrf.mxu0 }
 0x400   :  { %v1738_v14 = vadd.f32 %v1737_v48, %v1697_v11  ;;  %v1739_v22 = vpop.f32.mrf.mxu1 }
 0x401   :  { %v1699_v33 = vpop.f32.mrf.mxu0 }
 0x402   :  { %v1740_v15 = vpop.f32.mrf.mxu1  ;;  %v1742_v16 = vmax.f32 %v1736_v13, %v1738_v14 }
 0x404   :  { %1743 = vmax.xlane.f32.xlu0 %v1742_v16 }
 0x48d   :  { %v1744_v41 = vpop.xlane.xlu0 %1743 }
 0x48e   :  { %v1745_v42 = vsub.f32 %v1736_v13, %v1744_v41  ;;  %v1746_v43 = vsub.f32 %v1738_v14, %v1744_v41 }
 0x490   :  { %v1747_v44 = vmul.f32 1.442695, %v1745_v42  ;;  %v1749_v45 = vmul.f32 1.442695, %v1746_v43 }
 0x492   :  { %2464 = vpow2.f32 %v1747_v44 }
 0x493   :  { %2466 = vpow2.f32 %v1749_v45 }
 0x49f   :  { %v2465_v46 = vpop.eup %2464 }
 0x4a0   :  { %v2467_v47 = vpop.eup %2466 }
 0x4a1   :  { %1892 = vmatprep.mubr.f32.mxu0 %v2467_v47 }
 0x4a2   :  { %1893 = vmatmul.mubr.f32.vlgmr.msra.gmra.mxu0 %v2465_v46 }
 0x562   :  { %v1894_v52 = vpop.f32.mrf.mxu0 }
 0x563   :  { %v1895_v53 = vadd.f32 %v1894_v52, %v1821_v50 }
 0x564   :  { %v1896_v54 = vpop.f32.mrf.mxu0 }
 0x565   :  { %2468 = vrcp.f32 %v1895_v53  ;;  %v1897_v55 = vadd.f32 %v1896_v54, %v1825_v51 }
 0x567   :  { %2470 = vrcp.f32 %v1897_v55 }
 0x572   :  { %v2469_v56 = vpop.eup %2468 }
 0x573   :  { %v1901_v57 = vmul.f32 %v2469_v56, %v2465_v46 }
 0x574   :  { %v2471_v58 = vpop.eup %2470 }
 0x575   :  { %v1902_v59 = vmul.f32 %v2471_v58, %v2467_v47  ;;  %1903 = vst [vmem:[#allocation14] sm:$0xff] %v1901_v57 }
 0x577   :  { %1904 = vst [vmem:[#allocation14 + $0x8] sm:$0xff] %v1902_v59 }
 0x578   :  { %2623 = shalt.err (!%p2620_p11)
}
 0x579   :  { %1914 = dma.vmem_to_hbm [thread:$0]  %s1912_s6, 256, %s2754_s7, [#allocation4]  }
 0x57a   :  { %2640 = dma.done.wait [#allocation4], 256  }
 0x57b   :  { %2641 = vsyncadd [#allocation4], 4294967040 }
 0x57c   :  { %1918 = vsyncpa [#allocation3], 1 }
 0x57d   :  { %1919 = vsyncpa [#allocation6], 1 }
 0x57e   :  { %1920 = vsyncpa [#allocation9], 1 }
 0x57f   :  { %1921 = vsyncpa [#allocation12], 1 }
 0x580   :  { %1922 = vsyncpa [#allocation4], 1 }

</bundles_post_ra>
